<compile_context>
chip_gen: v6e
topology: v6e:2x2x1
jax: 0.10.0
libtpu: 0.0.40
codegen_flags: <defaults>
</compile_context>

<pallas_src>
import jax
import jax.numpy as jnp
from jax.experimental import pallas as pl
from jax.experimental.pallas import tpu as pltpu


def _round_up(x, m):
    return ((x + m - 1) // m) * m


def clip_vision_embed_kernel(x_ref, w_ref, add_ref, o_ref):
    # x_ref:   (1, tile_p, Kp)  patch features (row 0 of each image is zeros)
    # w_ref:   (Kp, Dp)         patch projection (conv weight, transposed)
    # add_ref: (tile_p, Dp)     class_embedding (+pos[0]) / position embeddings
    # o_ref:   (1, tile_p, Dp)
    acc = jnp.dot(x_ref[0], w_ref[...], preferred_element_type=jnp.float32)
    acc = acc + add_ref[...].astype(jnp.float32)   # bias/pos path stays f32
    o_ref[0] = acc.astype(o_ref.dtype)


def _pick_tile_p(n_pos, Kp, Dp, x_isz, out_isz, w_isz, row_align,
                 budget_bytes=24 * 1024 * 1024):
    """Largest row tile whose double-buffered working set fits the budget."""
    w_bytes = 2 * Kp * Dp * w_isz                      # 2 pipeline buffers
    per_row = 2 * Kp * x_isz + 2 * Dp * out_isz + 2 * Dp * 4   # x, out, add(f32)
    avail = max(budget_bytes - w_bytes, per_row * row_align)
    tile = max((avail // per_row // row_align) * row_align, row_align)
    # No point in tiling past the (aligned) sequence length.
    tile = min(tile, _round_up(n_pos, row_align))
    return int(tile), int(per_row), int(w_bytes)


def clip_vision_embeddings(pixel_values, patch_weight, class_embedding,
                           position_embedding, *, patch_size, tile_p=None,
                           matmul_dtype=jnp.bfloat16, out_dtype=None):
    """Fused CLIP vision embeddings.

    pixel_values:        (B, C, H, W)
    patch_weight:        (D, C, P, P)   Conv2d weight (no bias)
    class_embedding:     (D,)
    position_embedding:  (num_positions, D), num_positions = (H//P)*(W//P)+1
    matmul_dtype:        dtype for the MXU operands (default bf16); f32
                         accumulation and f32 pos-embed add regardless.
    out_dtype:           output dtype (default: pixel_values.dtype).
    Returns (B, num_positions, D).
    """
    B, C, Himg, Wimg = pixel_values.shape
    P = patch_size
    D = patch_weight.shape[0]
    Hp, Wp = Himg // P, Wimg // P
    n_patches = Hp * Wp
    n_pos = n_patches + 1
    K = C * P * P

    if out_dtype is None:
        out_dtype = pixel_values.dtype

    # ---- cast as early as possible (halves every later HBM pass) ----------
    if matmul_dtype is not None and pixel_values.dtype != matmul_dtype:
        pixel_values = pixel_values.astype(matmul_dtype)
    w2d = patch_weight.reshape(D, K).T                           # (K, D)
    if matmul_dtype is not None and w2d.dtype != matmul_dtype:
        w2d = w2d.astype(matmul_dtype)

    # ---- patch extraction (stride==kernel conv == per-patch matmul) -------
    # TODO(synk): the (c, ph, pw) unfold is still a wrapper-side XLA
    # transpose; moving it into the kernel (pixel row blocks + XLU swizzle in
    # VMEM) would remove one full HBM pass for large batches.
    x = pixel_values.reshape(B, C, Hp, P, Wp, P)
    x = x.transpose(0, 2, 4, 1, 3, 5)                 # (B, Hp, Wp, C, P, P)
    patches = x.reshape(B, n_patches, K)

    # Additive table: row 0 carries class token (+ its position embedding);
    # rows 1.. carry the patch position embeddings.  Kept f32 in HBM.
    add_table = position_embedding.astype(jnp.float32).at[0].add(
        class_embedding.astype(jnp.float32))                     # (n_pos, D)

    # ---- pad to TPU-friendly shapes ----------------------------------------
    Kp = _round_up(K, 128)          # lane-dense matmul contraction dim
    Dp = _round_up(D, 128)          # lane-dense output (unmasked vst)
    x_isz = jnp.dtype(patches.dtype).itemsize
    w_isz = jnp.dtype(w2d.dtype).itemsize
    out_isz = jnp.dtype(out_dtype).itemsize
    # bf16/fp8 pack along sublanes -> keep row tiles 16-aligned for <32-bit.
    row_align = 16 if x_isz < 4 else 8

    if tile_p is None:
        tile_p, per_row, w_bytes = _pick_tile_p(
            n_pos, Kp, Dp, x_isz, out_isz, w_isz, row_align)
    else:
        tile_p = max(_round_up(tile_p, row_align), row_align)
        per_row = 2 * Kp * x_isz + 2 * Dp * out_isz + 2 * Dp * 4
        w_bytes = 2 * Kp * Dp * w_isz
    Sp = _round_up(n_pos, tile_p)

    # v7x has 2 TensorCores: make sure a single small image still yields >=2
    # parallel blocks by splitting the sequence axis.
    if B == 1 and Sp // tile_p == 1 and tile_p > row_align:
        half = max(_round_up((tile_p + 1) // 2, row_align), row_align)
        if half < tile_p:
            tile_p = half
            Sp = _round_up(n_pos, tile_p)

    # One fused pad: leading zero row = class-token features, trailing rows =
    # sequence padding, trailing cols = contraction padding.
    x_p = jnp.pad(patches, ((0, 0), (1, Sp - n_pos), (0, Kp - K)))  # (B,Sp,Kp)
    w_p = jnp.pad(w2d, ((0, Kp - K), (0, Dp - D)))                  # (Kp,Dp)
    add_p = jnp.pad(add_table, ((0, Sp - n_pos), (0, Dp - D)))      # (Sp,Dp) f32

    n_tiles = Sp // tile_p
    grid = (n_tiles, B)             # B innermost -> add block stays resident

    # VMEM budget: W (2 buffers) + per-row streams for one tile, with headroom.
    working_set = w_bytes + per_row * tile_p
    vmem_limit = int(min(max(2 * working_set, 16 * 1024 * 1024),
                         48 * 1024 * 1024))

    cost = pl.CostEstimate(
        flops=2 * B * Sp * Kp * Dp,
        transcendentals=0,
        bytes_accessed=(x_p.size * x_p.dtype.itemsize
                        + w_p.size * w_p.dtype.itemsize
                        + add_p.size * add_p.dtype.itemsize
                        + B * Sp * Dp * out_isz),
    )

    out = pl.pallas_call(
        clip_vision_embed_kernel,
        out_shape=jax.ShapeDtypeStruct((B, Sp, Dp), out_dtype),
        grid_spec=pltpu.PrefetchScalarGridSpec(
            num_scalar_prefetch=0,
            grid=grid,
            in_specs=[
                pl.BlockSpec((1, tile_p, Kp), lambda t, b: (b, t, 0)),   # x
                pl.BlockSpec((Kp, Dp), lambda t, b: (0, 0)),             # W
                pl.BlockSpec((tile_p, Dp), lambda t, b: (t, 0)),         # add
            ],
            out_specs=pl.BlockSpec((1, tile_p, Dp), lambda t, b: (b, t, 0)),
        ),
        compiler_params=pltpu.CompilerParams(
            dimension_semantics=("parallel", "parallel"),
            vmem_limit_bytes=vmem_limit),
        cost_estimate=cost,
    )(x_p, w_p, add_p)

    if Sp != n_pos or Dp != D:
        out = out[:, :n_pos, :D]
    return out


def reference_embeddings(pixel_values, patch_weight, class_embedding,
                         position_embedding, patch_size):
    """Pure-JAX mirror of the PyTorch forward (conv -> flatten -> cat -> +pos)."""
    B = pixel_values.shape[0]
    D = patch_weight.shape[0]
    P = patch_size
    patch_embeds = jax.lax.conv_general_dilated(
        pixel_values, patch_weight, window_strides=(P, P), padding="VALID",
        dimension_numbers=("NCHW", "OIHW", "NCHW"),
        precision=jax.lax.Precision.HIGHEST)                      # (B, D, Hp, Wp)
    Hp, Wp = patch_embeds.shape[2], patch_embeds.shape[3]
    patch_embeds = patch_embeds.reshape(B, D, Hp * Wp).transpose(0, 2, 1)
    class_embeds = jnp.broadcast_to(class_embedding, (B, 1, D))
    emb = jnp.concatenate([class_embeds, patch_embeds], axis=1)
    return emb + position_embedding[None, :, :]


# TODO(synk): the position_embedding backward hook (gradient-norm logging) is
# training-only and has no forward-pass equivalent, so it is not translated.

if __name__ == "__main__":
    # Small shapes consistent with the module: batch=2, channels=3,
    # image_size=32, patch_size=8, hidden=32 -> 16 patches + 1 class token.
    B, C, IMG, P, D = 2, 3, 32, 8, 32
    n_pos = (IMG // P) ** 2 + 1

    key = jax.random.PRNGKey(0)
    k_px, k_w, k_cls, k_pos = jax.random.split(key, 4)
    pixel_values = jax.random.normal(k_px, (B, C, IMG, IMG), dtype=jnp.float32)
    patch_weight = jax.random.normal(k_w, (D, C, P, P), dtype=jnp.float32) * 0.02
    class_embedding = jax.random.normal(k_cls, (D,), dtype=jnp.float32)
    position_embedding = jax.random.normal(k_pos, (n_pos, D), dtype=jnp.float32) * 0.02

    ref = reference_embeddings(pixel_values, patch_weight, class_embedding,
                               position_embedding, P)

    # Default path: bf16 MXU operands, f32 accumulate + f32 pos-embed add.
    out_bf16 = clip_vision_embeddings(pixel_values, patch_weight, class_embedding,
                                      position_embedding, patch_size=P)
    out_bf16 = jax.block_until_ready(out_bf16)
    assert out_bf16.shape == (B, n_pos, D)
    assert jnp.allclose(out_bf16, ref, atol=5e-2, rtol=5e-2), "bf16 mismatch vs reference"

    # Full-f32 operand path.
    out_f32 = clip_vision_embeddings(pixel_values, patch_weight, class_embedding,
                                     position_embedding, patch_size=P,
                                     matmul_dtype=None)
    out_f32 = jax.block_until_ready(out_f32)
    assert out_f32.shape == (B, n_pos, D)
    assert jnp.allclose(out_f32, ref, atol=1e-2, rtol=1e-2), "f32 mismatch vs reference"

    # bf16 output path (downstream model in bf16).
    out_bf16_out = clip_vision_embeddings(pixel_values, patch_weight,
                                          class_embedding, position_embedding,
                                          patch_size=P, out_dtype=jnp.bfloat16)
    out_bf16_out = jax.block_until_ready(out_bf16_out)
    assert out_bf16_out.dtype == jnp.bfloat16
    assert jnp.allclose(out_bf16_out.astype(jnp.float32), ref,
                        atol=1e-1, rtol=1e-1), "bf16-out mismatch vs reference"

    print("KERNEL_OK")
</pallas_src>

<mosaic_0001>
module attributes {stable_mosaic.version = 11 : i64} {
  func.func @clip_vision_embed_kernel(%arg0: i32, %arg1: i32, %arg2: memref<1x32x256xbf16, #tpu.memory_space<vmem>>, %arg3: memref<256x128xbf16, #tpu.memory_space<vmem>>, %arg4: memref<32x128xf32, #tpu.memory_space<vmem>>, %arg5: memref<1x32x128xf32, #tpu.memory_space<vmem>>) attributes {dimension_semantics = [#tpu.dimension_semantics<parallel>, #tpu.dimension_semantics<parallel>], iteration_bounds = array<i64: 1, 2>, scalar_prefetch = 0 : i64, scratch_operands = 0 : i64, tpu.core_type = #tpu.core_type<tc>, window_params = [{transform_indices = @transform_0, window_bounds = array<i64: 1, 32, 256>}, {pipeline_mode = #tpu.pipeline_mode<synchronous>, transform_indices = @transform_1, window_bounds = array<i64: 256, 128>}, {transform_indices = @transform_2, window_bounds = array<i64: 32, 128>}, {transform_indices = @transform_3, window_bounds = array<i64: 1, 32, 128>}]} {
    %c0 = arith.constant 0 : index
    %c0_0 = arith.constant 0 : index
    %c0_1 = arith.constant 0 : index
    %0 = vector.load %arg2[%c0, %c0_0, %c0_1] : memref<1x32x256xbf16, #tpu.memory_space<vmem>>, vector<1x32x256xbf16>
    %1 = vector.shape_cast %0 : vector<1x32x256xbf16> to vector<32x256xbf16>
    %c0_2 = arith.constant 0 : index
    %c0_3 = arith.constant 0 : index
    %2 = vector.load %arg3[%c0_2, %c0_3] : memref<256x128xbf16, #tpu.memory_space<vmem>>, vector<256x128xbf16>
    %cst = arith.constant dense<0.000000e+00> : vector<32x128xf32>
    %3 = tpu.matmul %1, %2, %cst {dimension_numbers = #tpu.dot_dimension_numbers<[1], [0], [0], [1], [0, 0, 1, 1], [], []>} : vector<32x256xbf16>, vector<256x128xbf16>, vector<32x128xf32> -> vector<32x128xf32>
    %c0_4 = arith.constant 0 : index
    %c0_5 = arith.constant 0 : index
    %4 = vector.load %arg4[%c0_4, %c0_5] : memref<32x128xf32, #tpu.memory_space<vmem>>, vector<32x128xf32>
    %5 = arith.addf %3, %4 : vector<32x128xf32>
    %c0_6 = arith.constant 0 : index
    %c0_7 = arith.constant 0 : index
    %c0_8 = arith.constant 0 : index
    %6 = vector.load %arg5[%c0_6, %c0_7, %c0_8] : memref<1x32x128xf32, #tpu.memory_space<vmem>>, vector<1x32x128xf32>
    %7 = vector.shape_cast %6 : vector<1x32x128xf32> to vector<32x128xf32>
    %8 = vector.shape_cast %5 : vector<32x128xf32> to vector<1x32x128xf32>
    tpu.vector_store %arg5[%c0_6, %c0_7, %c0_8], %8 {strides = array<i32>} : memref<1x32x128xf32, #tpu.memory_space<vmem>>, vector<1x32x128xf32>,
    return
  }
  func.func @transform_0(%arg0: i32, %arg1: i32) -> (i32, i32, i32) {
    %c0_i32 = arith.constant 0 : i32
    %c0_i32_0 = arith.constant 0 : i32
    return %arg1, %arg0, %c0_i32 : i32, i32, i32
  }
  func.func @transform_1(%arg0: i32, %arg1: i32) -> (i32, i32) {
    %c0_i32 = arith.constant 0 : i32
    %c0_i32_0 = arith.constant 0 : i32
    %c0_i32_1 = arith.constant 0 : i32
    return %c0_i32, %c0_i32_0 : i32, i32
  }
  func.func @transform_2(%arg0: i32, %arg1: i32) -> (i32, i32) {
    %c0_i32 = arith.constant 0 : i32
    %c0_i32_0 = arith.constant 0 : i32
    return %arg0, %c0_i32 : i32, i32
  }
  func.func @transform_3(%arg0: i32, %arg1: i32) -> (i32, i32, i32) {
    %c0_i32 = arith.constant 0 : i32
    %c0_i32_0 = arith.constant 0 : i32
    return %arg1, %arg0, %c0_i32 : i32, i32, i32
  }
}

</mosaic_0001>

<bundles_post_ra>
// kernel: tpu_custom_call.1
= control target key start
LH: loop header
LB: loop body
LE: loop exit
PB: predicated region body
PF: predicated region fallthrough
CT: control target
= control target key end

     0   :  { %8 = vsyncpa [#allocation3], 0  ;;  %s1178_s0 = inlined_call_operand.hbm [shape: bf16[2,32,256], index: 0, kind: input, shape index: {}]   ;;  %s1179_s1 = inlined_call_operand.hbm [shape: bf16[256,128], index: 1, kind: input, shape index: {}]   ;;  %s1180_s2 = inlined_call_operand.hbm [shape: f32[32,128], index: 2, kind: input, shape index: {}]   ;;  %s1181_s3 = inlined_call_operand.hbm [shape: f32[2,32,128], index: 3, kind: output, shape index: {}]  }
   0x1   :  { %10 = vsyncpa [#allocation3 + $0x1], 0 }
   0x2   :  { %11 = vsyncpa [#allocation6], 0 }
   0x3   :  { %12 = vsyncpa [#allocation4], 0 }
   0x4   :  { %14 = vsyncpa [#allocation4 + $0x1], 0  ;;  %s974_s12 = smov 0   ;;  %s976_s13 = smov 0  }
   0x5   :  { %s978_s14 = smov 0   ;;  %s980_s15 = smov 0  }
   0x6   :  { %s982_s16 = smov 0   ;;  %s984_s17 = smov 0  }
   0x7 LB: > { %s582_s18 = sadd.s32 4294967295, %s942_s17   ;;  %s583_s19 = sadd.s32 4294967294, %s942_s17   ;;  %s942_s17 = sphi %s984_s17, %s20_s17   ;;  %s938_s16 = sphi %s982_s16, %s1203_s16   ;;  %s934_s15 = sphi %s980_s15, %s1202_s15   ;;  %s930_s14 = sphi %s978_s14, %s1201_s14   ;;  %s926_s13 = sphi %s976_s13, %s1200_s13   ;;  %s922_s12 = sphi %s974_s12, %s1199_s12  }
   0x8   : > { %p54_p0 = scmp.ne.s32.totalorder %s926_s13, %s922_s12  ;;  %p1008_p1 = scmp.eq.s32.totalorder %s582_s18, 0 }
   0x9   : > { %p1012_p2 = scmp.eq.s32.totalorder %s582_s18, 1  ;;  %p133_p3 = scmp.eq.s32.totalorder %s583_s19, 1 }
   0xa   : > { %s1186_s20 = scalar_select %p1008_p1, 1, 0 }
   0xb   : > { %p1018_p4 = por %p1008_p1, %p54_p0  ;;  %p584_p5 = scmp.ge.s32.totalorder %s942_s17, 1 }
   0xc   : > { %p1023_p6 = por %p133_p3, %p54_p0  ;;  %p140_p7 = scmp.lt.s32.totalorder %s942_s17, 3 }
   0xd   : > { %s1188_s22 = scalar_select %p1018_p4, 1, 0 }
   0xe   : > { %s1189_s23 = scalar_select %p1023_p6, 1, 0 }
   0xf   : > { %p1028_p8 = pnand %p584_p5, %p140_p7  ;;  %s944_s25 = smov [#allocation5]  }
  0x10   : > { %s152_s26 = sshll.u32 %s944_s25, 4  ;;  %s945_s28 = smov [#allocation7]   ;;  %s153_s26 = int_to_ptr.vmem [resolvable:$true] %s152_s26 }
  0x11   : > { %p679_p9 = pneg %p1028_p8  ;;  %s168_s29 = sshll.u32 %s945_s28, 4  ;;  %s169_s29 = int_to_ptr.vmem [resolvable:$true] %s168_s29 }
  0x12   : > { %s789_s30 = scalar_lea.vmem %s153_s26, 2048  ;;  %p797_p5 = scmp.lt.s32.totalorder %s153_s26, %s153_s26 }
  0x13   : > { %p1037_p11 = pnand %p679_p9, %p1008_p1  ;;  %p790_p13 = scmp.ne.s32.totalorder %s153_s26, %s789_s30 }
  0x14   : > { %p798_p7 = scmp.lt.s32.totalorder %s789_s30, %s789_s30 }
  0x15   : > { %p780_p12 = pneg %p1037_p11 }
  0x16   : > { %p799_p10 = por %p798_p7, %p797_p5 }
  0x17   : > { %p792_p0 = pnand %p790_p13, %p780_p12 }
  0x19   : > { %p793_p3 = pneg %p792_p0 }
  0x1b   : > { %p800_p9 = pnand %p799_p10, %p793_p3 }
  0x1d   : > { %803 = shalt.err (!%p800_p9)
}
  0x1e   : > { %s946_s4 = smov 64   ;;  %s947_s5 = smov 4  }
  0x1f   : > { %682 = dma.hbm_to_vmem [thread:$0]  (!%p1037_p11), %s1179_s1, 2048, %s153_s26, [#allocation6], %s946_s4, %s946_s4, %s947_s5  }
  0x20   : > { %s815_s8 = scalar_lea.vmem %s169_s29, 512  ;;  %p823_p1 = scmp.lt.s32.totalorder %s169_s29, %s169_s29 }
  0x21   : > { %p816_p6 = scmp.ne.s32.totalorder %s169_s29, %s815_s8  ;;  %p824_p4 = scmp.lt.s32.totalorder %s815_s8, %s815_s8 }
  0x23   : > { %p818_p13 = pnand %p816_p6, %p780_p12  ;;  %p825_p5 = por %p824_p4, %p823_p1 }
  0x25   : > { %p819_p0 = pneg %p818_p13 }
  0x27   : > { %p826_p10 = pnand %p825_p5, %p819_p0 }
  0x29   : > { %829 = shalt.err (!%p826_p10)
}
  0x2a   : > { %s1185_s9 = smov 128   ;;  %s949_s10 = smov 8  }
  0x2b   : > { %685 = dma.hbm_to_vmem [thread:$0]  (!%p1037_p11), %s1180_s2, 512, %s169_s29, [#allocation6], %s1185_s9, %s1185_s9, %s949_s10  }
  0x2c   : > { %s29_s19 = sadd.s32 1, %s938_s16  ;;  %s41_s25 = sadd.s32 1, %s930_s14 }
  0x2d   : > { %p30_p1 = scmp.ge.s32.totalorder %s29_s19, 2  ;;  %p48_p4 = scmp.ne.s32.totalorder %s930_s14, %s926_s13 }
  0x2e   : > { %p49_p6 = scmp.eq.s32.totalorder %s942_s17, 0  ;;  %p696_p12 = scmp.lt.s32.totalorder %s942_s17, 2 }
  0x2f   : > { %s1205_s19 = smov (%p30_p1, %s29_s19), 0  ;;  %p1072_p7 = por %p1012_p2, %p48_p4 }
  0x30   : > { %p50_p3 = por %p49_p6, %p48_p4  ;;  %s36_s27 = ssub.s32 %s938_s16, %s1205_s19 }
  0x31   : > { %s182_s28 = sand.u32 1, %s930_s14   ;;  %p39_p9 = scmp.eq.s32.totalorder %s36_s27, 0 }
  0x32   : > { %s588_s29 = sshll.u32 %s182_s28, 5  ;;  %s621_s30 = sshll.u32 %s938_s16, 9 }
  0x33   : > { %s1081_s4 = scalar_select %p39_p9, %s930_s14, %s41_s25  }
  0x34   : > { %s195_s7 = scalar_lea.hbm %s1178_s0, %s621_s30  ;;  %s186_s8 = scalar_lea.vmem [#allocation2], %s588_s29 }
  0x35   : > { %s196_s11 = sshll.u32 %s186_s8, 4  ;;  %p1088_p11 = pnand %p696_p12, %p50_p3  ;;  %s197_s11 = int_to_ptr.vmem [resolvable:$true] %s196_s11 }
  0x36   : > { %s183_s18 = scalar_lea.sflag [#allocation3], %s182_s28  ;;  %s843_s27 = scalar_lea.vmem %s197_s11, 512 }
  0x37   : > { %p832_p2 = pneg %p1088_p11  ;;  %p844_p13 = scmp.ne.s32.totalorder %s197_s11, %s843_s27 }
  0x38   : > { %s950_s25 = smov [#allocation2]  }
  0x39   : > { %p846_p0 = pnand %p844_p13, %p832_p2  ;;  %s848_s9 = sshll.u32 %s950_s25, 4  ;;  %s849_s9 = int_to_ptr.vmem [resolvable:$false] %s848_s9 }
  0x3a   : > { %s850_s30 = scalar_lea.vmem %s849_s9, 1024  ;;  %p851_p10 = scmp.lt.s32.totalorder %s197_s11, %s849_s9 }
  0x3b   : > { %p847_p5 = pneg %p846_p0  ;;  %p852_p1 = scmp.lt.s32.totalorder %s850_s30, %s843_s27 }
  0x3d   : > { %p853_p4 = por %p852_p1, %p851_p10 }
  0x3f   : > { %p854_p6 = pnand %p853_p4, %p847_p5 }
  0x41   : > { %857 = shalt.err (!%p854_p6)
}
  0x42   : > { %s1194_s29 = smov 128   ;;  %208 = sbr.rel (%p1028_p8) target bundleno = 325 (0x145), region = 32 }
  0x43   : > { %689 = dma.hbm_to_vmem [thread:$0]  (!%p1088_p11), %s195_s7, 512, %s197_s11, %s183_s18, %s1194_s29, %s1194_s29, %s949_s10  }
  0x44   : > { %s1102_s28 = sand.u32 (!%p1028_p8), 1, %s926_s13   ;;  %p1195_p12 = scmp.ne.s32.totalorder (!%p1028_p8), %s1188_s22, 0 }
  0x45   : > { %s592_s9 = sshll.u32 (!%p1028_p8), %s1102_s28, 5  ;;  %s211_s5 = scalar_lea.sflag (!%p1028_p8), [#allocation3], %s1102_s28 }
  0x46   : > { %s1108_s6 = scalar_lea.vmem (!%p1028_p8), [#allocation2], %s592_s9 }
  0x47   : > { %909 = dma.done.wait (%p1195_p12), %s211_s5, 512  }
  0x48   : > { %911 = vsyncadd (%p1195_p12), %s211_s5, 4294966784  ;;  %p1196_p3 = scmp.ne.s32.totalorder %s1186_s20, 0 }
  0x4a   : > { %913 = dma.done.wait (%p1196_p3), [#allocation6], 2560  }
  0x4b   : > { %915 = vsyncadd (%p1196_p3), [#allocation6], 4294964736  ;;  %v756_v0 = vld [vmem:[#allocation5 + $0x78] sm:$0xff]   ;;  %v758_v2 = vld [vmem:[#allocation5 + $0x70] sm:$0xff]   ;;  %s244_s20 = scalar_lea.vmem [#allocation8], %s592_s9  ;;  %s622_s24 = sshll.u32 %s934_s15, 9 }
  0x4c   : > { %v757_v1 = vld [vmem:[#allocation5 + $0x38] sm:$0xff]   ;;  %623 = vmatprep.subr.bf16.mxu0 %v756_v0  ;;  %651 = vmatprep.subr.bf16.mxu1 %v756_v0  ;;  %v759_v3 = vld [vmem:[#allocation5 + $0x30] sm:$0xff]   ;;  %v760_v4 = vld [vmem:[#allocation5 + $0x68] sm:$0xff]   ;;  %s474_s22 = sshll.u32 %s244_s20, 4  ;;  %s1130_s8 = scalar_lea.hbm %s1181_s3, %s622_s24  ;;  %s1125_s22 = int_to_ptr.vmem [resolvable:$true] %s474_s22 }
  0x4d   : > { %624 = vmatpush3.bf16.msra.mxu0 %v757_v1  ;;  %659 = vmatpush3.bf16.msra.mxu1 %v757_v1  ;;  %v761_v5 = vld [vmem:[#allocation5 + $0x28] sm:$0xff]   ;;  %v762_v6 = vld [vmem:[#allocation5 + $0x60] sm:$0xff]   ;;  %v764_v8 = vld [vmem:[#allocation5 + $0x58] sm:$0xff]   ;;  %s459_s15 = scalar_lea.sflag [#allocation4], %s1102_s28  ;;  %s858_s11 = scalar_lea.vmem %s1125_s22, 512 }
  0x4e   : > { %625 = vmatprep.subr.bf16.mxu0 %v758_v2  ;;  %652 = vmatprep.subr.bf16.mxu1 %v758_v2  ;;  %v763_v7 = vld [vmem:[#allocation5 + $0x20] sm:$0xff]   ;;  %v765_v9 = vld [vmem:[#allocation5 + $0x18] sm:$0xff]   ;;  %v766_v10 = vld [vmem:[#allocation5 + $0x50] sm:$0xff]   ;;  %p859_p8 = scmp.ne.s32.totalorder %s1125_s22, %s858_s11  ;;  %s951_s21 = smov [#allocation8]  }
  0x4f   : > { %v774_v11 = vld [vmem:[%s1108_s6 + $0x4] ss:$8 sps:$4 sm:$0xff]   ;;  %v777_v12 = vld [vmem:[%s1108_s6 + $0x14] ss:$8 sps:$4 sm:$0xff]   ;;  %v772_v18 = vld [vmem:[%s1108_s6] ss:$8 sps:$4 sm:$0xff]  }
  0x50   : > { %v767_v13 = vld [vmem:[#allocation5 + $0x10] sm:$0xff]   ;;  %v768_v14 = vld [vmem:[#allocation5 + $0x48] sm:$0xff]   ;;  %437 = vmatprep.mubr.bf16.mxu0 %v774_v11  ;;  %445 = vmatprep.mubr.bf16.mxu1 %v777_v12  ;;  %v770_v16 = vld [vmem:[#allocation5 + $0x40] sm:$0xff]   ;;  %p860_p9 = pnand %p859_p8, %p1072_p7  ;;  %s862_s18 = sshll.u32 %s951_s21, 4  ;;  %s863_s18 = int_to_ptr.vmem [resolvable:$false] %s862_s18 }
  0x51   : > { %626 = vmatpush3.bf16.msra.mxu0 %v759_v3  ;;  %660 = vmatpush3.bf16.msra.mxu1 %v759_v3  ;;  %v769_v15 = vld [vmem:[#allocation5 + $0x8] sm:$0xff]   ;;  %v771_v17 = vld [vmem:[#allocation5] sm:$0xff]   ;;  %v775_v19 = vld [vmem:[%s1108_s6 + $0x10] ss:$8 sps:$4 sm:$0xff]   ;;  %s864_s27 = scalar_lea.vmem %s863_s18, 1024  ;;  %p865_p2 = scmp.lt.s32.totalorder %s1125_s22, %s863_s18 }
  0x52   : > { %627 = vmatprep.subr.bf16.mxu0 %v760_v4  ;;  %653 = vmatprep.subr.bf16.mxu1 %v760_v4  ;;  %v285_v22 = vld [vmem:[#allocation7] sm:$0xff]  ;;  %v287_v24 = vld [vmem:[#allocation7 + $0x10] sm:$0xff]  ;;  %v286_v32 = vld [vmem:[#allocation7 + $0x8] sm:$0xff]  ;;  %p861_p11 = pneg %p860_p9  ;;  %p866_p13 = scmp.lt.s32.totalorder %s864_s27, %s858_s11 }
  0x53   : > { %v288_v34 = vld [vmem:[#allocation7 + $0x18] sm:$0xff] }
  0x54   : > { %p867_p0 = por %p866_p13, %p865_p2 }
  0x55   : > { %628 = vmatpush3.bf16.msra.mxu0 %v761_v5  ;;  %661 = vmatpush3.bf16.msra.mxu1 %v761_v5 }
  0x56   : > { %629 = vmatprep.subr.bf16.mxu0 %v762_v6  ;;  %654 = vmatprep.subr.bf16.mxu1 %v762_v6  ;;  %p868_p5 = pnand %p867_p0, %p861_p11 }
  0x59   : > { %630 = vmatpush3.bf16.msra.mxu0 %v763_v7  ;;  %662 = vmatpush3.bf16.msra.mxu1 %v763_v7 }
  0x5a   : > { %631 = vmatprep.subr.bf16.mxu0 %v764_v8  ;;  %655 = vmatprep.subr.bf16.mxu1 %v764_v8 }
  0x5d   : > { %632 = vmatpush3.bf16.msra.mxu0 %v765_v9  ;;  %663 = vmatpush3.bf16.msra.mxu1 %v765_v9 }
  0x5e   : > { %633 = vmatprep.subr.bf16.mxu0 %v766_v10  ;;  %656 = vmatprep.subr.bf16.mxu1 %v766_v10 }
  0x61   : > { %634 = vmatpush3.bf16.msra.mxu0 %v767_v13  ;;  %664 = vmatpush3.bf16.msra.mxu1 %v767_v13 }
  0x62   : > { %635 = vmatprep.subr.bf16.mxu0 %v768_v14  ;;  %657 = vmatprep.subr.bf16.mxu1 %v768_v14 }
  0x65   : > { %636 = vmatpush3.bf16.msra.mxu0 %v769_v15  ;;  %665 = vmatpush3.bf16.msra.mxu1 %v769_v15 }
  0x66   : > { %637 = vmatprep.subr.bf16.mxu0 %v770_v16  ;;  %658 = vmatprep.subr.bf16.mxu1 %v770_v16 }
  0x69   : > { %638 = vmatpush3.bf16.msra.mxu0 %v771_v17  ;;  %666 = vmatpush3.bf16.msra.mxu1 %v771_v17 }
  0x6c   : > { %438 = vmatmul.mubr.bf16.vlgmr.msra.gmra.mxu0 %v772_v18  ;;  %446 = vmatmul.mubr.bf16.vlgmr.msra.gmra.mxu1 %v775_v19 }
 0x12c   : > { %v639_v20 = vpop.f32.mrf.mxu0  ;;  %v645_v21 = vpop.f32.mrf.mxu1 }
 0x12e   : > { %v640_v23 = vpop.f32.mrf.mxu0  ;;  %v646_v25 = vpop.f32.mrf.mxu1 }
 0x12f   : > { %v641_v26 = vadd.f32 %v640_v23, %v639_v20  ;;  %v647_v27 = vadd.f32 %v646_v25, %v645_v21 }
 0x130   : > { %v642_v28 = vpop.f32.mrf.mxu0  ;;  %v648_v29 = vpop.f32.mrf.mxu1 }
 0x131   : > { %v440_v30 = vadd.f32 %v641_v26, %v285_v22  ;;  %v448_v31 = vadd.f32 %v647_v27, %v287_v24 }
 0x132   : > { %v643_v33 = vpop.f32.mrf.mxu0  ;;  %v649_v35 = vpop.f32.mrf.mxu1 }
 0x133   : > { %454 = vst [vmem:[%s244_s20] sm:$0xff] %v440_v30  ;;  %456 = vst [vmem:[%s244_s20 + $0x10] sm:$0xff] %v448_v31  ;;  %v644_v36 = vadd.f32 %v643_v33, %v642_v28  ;;  %v650_v37 = vadd.f32 %v649_v35, %v648_v29 }
 0x135   : > { %v443_v38 = vadd.f32 %v644_v36, %v286_v32  ;;  %v451_v39 = vadd.f32 %v650_v37, %v288_v34 }
 0x137   : > { %455 = vst [vmem:[%s244_s20 + $0x8] sm:$0xff] %v443_v38  ;;  %457 = vst [vmem:[%s244_s20 + $0x18] sm:$0xff] %v451_v39 }
 0x138   : > { %871 = shalt.err (!%p868_p5)
}
 0x139   : > { %s872_s25 = scalar_lea.hbm %s1130_s8, 512  ;;  %s876_s9 = scalar_lea.hbm %s1181_s3, 1024 }
 0x13a   : > { %p873_p10 = scmp.ne.s32.totalorder %s1130_s8, %s872_s25  ;;  %p877_p6 = scmp.lt.s32.totalorder %s1130_s8, %s1181_s3 }
 0x13b   : > { %p878_p12 = scmp.lt.s32.totalorder %s876_s9, %s872_s25 }
 0x13c   : > { %p874_p1 = pnand %p873_p10, %p1072_p7 }
 0x13d   : > { %p879_p3 = por %p878_p12, %p877_p6 }
 0x13e   : > { %p875_p4 = pneg %p874_p1 }
 0x140   : > { %p880_p8 = pnand %p879_p3, %p875_p4 }
 0x142   : > { %883 = shalt.err (!%p880_p8)
}
 0x143   : > { %s952_s20 = smov 128   ;;  %s953_s24 = smov 8  }
 0x144   : > { %677 = dma.vmem_to_hbm [thread:$0]  (%p1072_p7), %s1125_s22, 512, %s1130_s8, %s459_s15, %s952_s20, %s952_s20, %s953_s24  }
 0x145 PF: > { %s489_s10 = sand.u32 1, %s922_s12   ;;  %p1197_p9 = scmp.ne.s32.totalorder %s1189_s23, 0 }
 0x146   : > { %p1198_p11 = scmp.ge.s32.totalorder %s942_s17, 2  ;;  %s490_s7 = scalar_lea.sflag [#allocation4], %s489_s10 }
 0x148   : > { %p691_p2 = pnand %p1198_p11, %p1197_p9 }
 0x14a   : > { %p692_p13 = pneg %p691_p2 }
 0x14c   : > { %917 = dma.done.wait (%p692_p13), %s490_s7, 512  }
 0x14d   : > { %919 = vsyncadd (%p692_p13), %s490_s7, 4294966784  ;;  %s20_s17 = sadd.s32 1, %s942_s17   ;;  %s1199_s12 = smov %s926_s13 }
 0x14e   : > { %p17_p0 = scmp.ge.s32.totalorder %s20_s17, 4   ;;  %s1200_s13 = smov %s930_s14 }
 0x14f   : > { %s1201_s14 = smov %s1081_s4  ;;  %s1202_s15 = smov %s938_s16 }
 0x150   : > { %s1203_s16 = smov %s1205_s19  ;;  %19 = sbr.rel (!%p17_p0) target bundleno = 7 (0x7), region = 86 }
 0x155   :  { %495 = vsyncpa [#allocation3], 1 }
 0x156   :  { %497 = vsyncpa [#allocation3 + $0x1], 1 }
 0x157   :  { %498 = vsyncpa [#allocation6], 1 }
 0x158   :  { %499 = vsyncpa [#allocation4], 1 }
 0x159   :  { %501 = vsyncpa [#allocation4 + $0x1], 1 }

</bundles_post_ra>
